<compile_context>
chip_gen: v7x
topology: tpu7x:2x2x1
jax: 0.10.0
libtpu: 0.0.40
codegen_flags: <defaults>
</compile_context>

<pallas_src>
import functools
import math

import jax
import jax.numpy as jnp
from jax import lax
from jax.experimental import pallas as pl
from jax.experimental.pallas import tpu as pltpu


def _round_up(v, m):
    return (v + m - 1) // m * m


def _mln_kernel(x_ref, c_ref, wr_ref, br_ref, wgb_ref, bgb_ref, o_ref,
                *, eps, f_dim, matmul_dtype):
    # ---- LayerNorm (no affine), single-pass statistics, f32. ----
    x = x_ref[...].astype(jnp.float32)
    mean = jnp.mean(x, axis=-1, keepdims=True)
    msq = jnp.mean(x * x, axis=-1, keepdims=True)
    var = jnp.maximum(msq - mean * mean, 0.0)
    x_ln = (x - mean) * lax.rsqrt(var + eps)

    # ---- reduce: Linear(c_dim -> f_dim) + ReLU (bf16 operands, f32 accum). ----
    c = c_ref[...].astype(matmul_dtype)
    h = jnp.dot(c, wr_ref[...], preferred_element_type=jnp.float32)
    h = jnp.maximum(h + br_ref[...].astype(jnp.float32), 0.0)

    # ---- fused gamma/beta: one (tm, f_dim) x (f_dim, 2*f_dim) matmul. ----
    gb = jnp.dot(h.astype(matmul_dtype), wgb_ref[...],
                 preferred_element_type=jnp.float32)
    gb = gb + bgb_ref[...].astype(jnp.float32)
    gamma = gb[:, :f_dim]
    beta = gb[:, f_dim:]

    # Single fused epilogue store (lane-dense when f_dim % 128 == 0).
    o_ref[...] = (gamma * x_ln + beta).astype(o_ref.dtype)


def mln_forward(x, c, params, *, tm=256, eps=1e-5, matmul_dtype=jnp.bfloat16):
    """x: (..., f_dim), c: (..., c_dim). Returns same shape/dtype as x."""
    f_dim = x.shape[-1]
    c_dim = c.shape[-1]
    lead = x.shape[:-1]
    assert c.shape[:-1] == lead

    n = math.prod(lead)
    x2 = x.reshape(n, f_dim)
    c2 = c.reshape(n, c_dim)

    # Row tile: multiple of 8 (sublanes), no larger than needed; pad rows so the
    # grid divides exactly (padded rows produce finite junk that is sliced off).
    tm = max(8, min(int(tm), _round_up(n, 8)))
    tm = _round_up(tm, 8)
    n_pad = _round_up(n, tm)
    if n_pad != n:
        x2 = jnp.pad(x2, ((0, n_pad - n), (0, 0)))
        c2 = jnp.pad(c2, ((0, n_pad - n), (0, 0)))
    grid = (n_pad // tm,)

    # Weights: PyTorch (out, in) -> (in, out); gamma/beta fused along out dim.
    # Matmul operands pre-cast to matmul_dtype; biases stay f32 (post-accumulate).
    wr = params["reduce_w"].T.astype(matmul_dtype)              # (c_dim, f_dim)
    br = params["reduce_b"].astype(jnp.float32)[None, :]        # (1, f_dim)
    wgb = jnp.concatenate([params["gamma_w"].T, params["beta_w"].T],
                          axis=1).astype(matmul_dtype)          # (f_dim, 2*f_dim)
    bgb = jnp.concatenate([params["gamma_b"], params["beta_b"]],
                          axis=0).astype(jnp.float32)[None, :]  # (1, 2*f_dim)

    w_itemsize = jnp.dtype(matmul_dtype).itemsize
    weight_bytes = (wr.size + wgb.size) * w_itemsize + (br.size + bgb.size) * 4
    tile_bytes = tm * (2 * f_dim + c_dim) * x2.dtype.itemsize
    # Double-buffered row tiles + resident weights + headroom; capped at 32 MiB
    # so the limit is valid on v5e/v6e (128 MiB VMEM) and v7x (64 MiB VMEM).
    vmem_limit = int(min(32 * 2**20,
                         max(8 * 2**20, 4 * tile_bytes + 4 * weight_bytes)))

    cost = pl.CostEstimate(
        flops=int(2 * n_pad * f_dim * (c_dim + 2 * f_dim) + 8 * n_pad * f_dim),
        transcendentals=int(n_pad),
        bytes_accessed=int(n_pad * (2 * f_dim + c_dim) * x2.dtype.itemsize
                           + weight_bytes),
    )

    resident = lambda shape: pl.BlockSpec(shape, lambda i: (0, 0))

    out = pl.pallas_call(
        functools.partial(_mln_kernel, eps=eps, f_dim=f_dim,
                          matmul_dtype=matmul_dtype),
        out_shape=jax.ShapeDtypeStruct((n_pad, f_dim), x.dtype),
        grid_spec=pltpu.PrefetchScalarGridSpec(
            num_scalar_prefetch=0,
            grid=grid,
            in_specs=[
                pl.BlockSpec((tm, f_dim), lambda i: (i, 0)),   # x rows
                pl.BlockSpec((tm, c_dim), lambda i: (i, 0)),   # c rows
                resident((c_dim, f_dim)),                      # W_reduce
                resident((1, f_dim)),                          # b_reduce
                resident((f_dim, 2 * f_dim)),                  # [W_gamma | W_beta]
                resident((1, 2 * f_dim)),                      # [b_gamma | b_beta]
            ],
            out_specs=pl.BlockSpec((tm, f_dim), lambda i: (i, 0)),
        ),
        compiler_params=pltpu.CompilerParams(
            dimension_semantics=("parallel",),
            vmem_limit_bytes=vmem_limit),
        cost_estimate=cost,
    )(x2, c2, wr, br, wgb, bgb)

    if n_pad != n:
        out = out[:n]
    return out.reshape(*lead, f_dim)


def init_mln_params(key, c_dim, f_dim, dtype=jnp.float32):
    """Deterministic synthetic init mirroring MLN.__init__/reset_parameters."""
    k1, k2 = jax.random.split(key)
    bound_w = 1.0 / math.sqrt(c_dim)
    reduce_w = jax.random.uniform(k1, (f_dim, c_dim), dtype, -bound_w, bound_w)
    reduce_b = jax.random.uniform(k2, (f_dim,), dtype, -bound_w, bound_w)
    # reset_parameters(): gamma.weight=0, gamma.bias=1, beta.weight=0, beta.bias=0.
    gamma_w = jnp.zeros((f_dim, f_dim), dtype)
    gamma_b = jnp.ones((f_dim,), dtype)
    beta_w = jnp.zeros((f_dim, f_dim), dtype)
    beta_b = jnp.zeros((f_dim,), dtype)
    return dict(reduce_w=reduce_w, reduce_b=reduce_b,
                gamma_w=gamma_w, gamma_b=gamma_b,
                beta_w=beta_w, beta_b=beta_b)


def _reference(x, c, params, eps=1e-5):
    mean = jnp.mean(x, axis=-1, keepdims=True)
    var = jnp.mean((x - mean) ** 2, axis=-1, keepdims=True)
    x_ln = (x - mean) / jnp.sqrt(var + eps)
    h = jnp.maximum(c @ params["reduce_w"].T + params["reduce_b"], 0.0)
    gamma = h @ params["gamma_w"].T + params["gamma_b"]
    beta = h @ params["beta_w"].T + params["beta_b"]
    return gamma * x_ln + beta


if __name__ == "__main__":
    key = jax.random.PRNGKey(0)
    (kx, kc, kp, kx2, kc2, kw, kb, kg1, kg2, kb1, kb2) = jax.random.split(key, 11)

    # Test 1: module-faithful init (reset_parameters => gamma=1, beta=0) on a
    # small lane-aligned shape; output must equal LayerNorm(x) (tight tolerance).
    batch, seq = 2, 8
    c_dim, f_dim = 32, 128
    x = jax.random.normal(kx, (batch, seq, f_dim), jnp.float32)
    c = jax.random.normal(kc, (batch, seq, c_dim), jnp.float32)
    params = init_mln_params(kp, c_dim, f_dim)
    out = jax.block_until_ready(mln_forward(x, c, params))
    ref = _reference(x, c, params)
    assert out.shape == x.shape
    assert jnp.allclose(out, ref, atol=1e-4, rtol=1e-4), "default-init mismatch"

    # Test 2: random (non-zero) gamma/beta weights, StreamPETR-like row count
    # (900 queries -> exercises the cdiv/padding path with the 256-row tile) at
    # the module's default f_dim=256. bf16 matmul operands with f32 accum, so
    # compare in relative L2 against the f32 reference.
    c_dim2, f_dim2, nq = 32, 256, 900
    x_b = jax.random.normal(kx2, (1, nq, f_dim2), jnp.float32)
    c_b = jax.random.normal(kc2, (1, nq, c_dim2), jnp.float32)
    bw = 1.0 / math.sqrt(c_dim2)
    bf = 1.0 / math.sqrt(f_dim2)
    params2 = dict(
        reduce_w=jax.random.uniform(kw, (f_dim2, c_dim2), jnp.float32, -bw, bw),
        reduce_b=jax.random.uniform(kb, (f_dim2,), jnp.float32, -bw, bw),
        gamma_w=jax.random.uniform(kg1, (f_dim2, f_dim2), jnp.float32, -bf, bf),
        gamma_b=jax.random.uniform(kg2, (f_dim2,), jnp.float32, -bf, bf),
        beta_w=jax.random.uniform(kb1, (f_dim2, f_dim2), jnp.float32, -bf, bf),
        beta_b=jax.random.uniform(kb2, (f_dim2,), jnp.float32, -bf, bf),
    )
    out2 = jax.block_until_ready(mln_forward(x_b, c_b, params2))
    ref2 = _reference(x_b, c_b, params2)
    assert out2.shape == x_b.shape
    rel = jnp.linalg.norm(out2 - ref2) / (jnp.linalg.norm(ref2) + 1e-6)
    assert rel < 2e-2, f"bf16 kernel relative error too large: {rel}"

    print("KERNEL_OK")
</pallas_src>

<mosaic_0001>
module attributes {stable_mosaic.version = 11 : i64} {
  func.func @_mln_kernel(%arg0: i32, %arg1: memref<16x128xf32, #tpu.memory_space<vmem>>, %arg2: memref<16x32xf32, #tpu.memory_space<vmem>>, %arg3: memref<32x128xbf16, #tpu.memory_space<vmem>>, %arg4: memref<1x128xf32, #tpu.memory_space<vmem>>, %arg5: memref<128x256xbf16, #tpu.memory_space<vmem>>, %arg6: memref<1x256xf32, #tpu.memory_space<vmem>>, %arg7: memref<16x128xf32, #tpu.memory_space<vmem>>) attributes {dimension_semantics = [#tpu.dimension_semantics<parallel>], iteration_bounds = array<i64: 1>, scalar_prefetch = 0 : i64, scratch_operands = 0 : i64, tpu.core_type = #tpu.core_type<tc>, window_params = [{transform_indices = @transform_0, window_bounds = array<i64: 16, 128>}, {transform_indices = @transform_1, window_bounds = array<i64: 16, 32>}, {pipeline_mode = #tpu.pipeline_mode<synchronous>, transform_indices = @transform_2, window_bounds = array<i64: 32, 128>}, {pipeline_mode = #tpu.pipeline_mode<synchronous>, transform_indices = @transform_3, window_bounds = array<i64: 1, 128>}, {pipeline_mode = #tpu.pipeline_mode<synchronous>, transform_indices = @transform_4, window_bounds = array<i64: 128, 256>}, {pipeline_mode = #tpu.pipeline_mode<synchronous>, transform_indices = @transform_5, window_bounds = array<i64: 1, 256>}, {transform_indices = @transform_6, window_bounds = array<i64: 16, 128>}]} {
    %c0 = arith.constant 0 : index
    %c0_0 = arith.constant 0 : index
    %0 = vector.load %arg1[%c0, %c0_0] : memref<16x128xf32, #tpu.memory_space<vmem>>, vector<16x128xf32>
    %cst = arith.constant dense<0.000000e+00> : vector<16xf32>
    %1 = vector.multi_reduction <add>, %0, %cst [1] : vector<16x128xf32> to vector<16xf32>
    %2 = vector.shape_cast %1 : vector<16xf32> to vector<16x1xf32>
    %cst_1 = arith.constant 1.280000e+02 : f32
    %3 = vector.broadcast %cst_1 : f32 to vector<16x1xf32>
    %4 = arith.divf %2, %3 : vector<16x1xf32>
    %5 = arith.mulf %0, %0 : vector<16x128xf32>
    %cst_2 = arith.constant dense<0.000000e+00> : vector<16xf32>
    %6 = vector.multi_reduction <add>, %5, %cst_2 [1] : vector<16x128xf32> to vector<16xf32>
    %7 = vector.shape_cast %6 : vector<16xf32> to vector<16x1xf32>
    %cst_3 = arith.constant 1.280000e+02 : f32
    %8 = vector.broadcast %cst_3 : f32 to vector<16x1xf32>
    %9 = arith.divf %7, %8 : vector<16x1xf32>
    %10 = arith.mulf %4, %4 : vector<16x1xf32>
    %11 = arith.subf %9, %10 : vector<16x1xf32>
    %cst_4 = arith.constant 0.000000e+00 : f32
    %12 = vector.broadcast %cst_4 : f32 to vector<16x1xf32>
    %13 = arith.maximumf %11, %12 : vector<16x1xf32>
    %14 = vector.broadcast %4 : vector<16x1xf32> to vector<16x128xf32>
    %15 = arith.subf %0, %14 : vector<16x128xf32>
    %cst_5 = arith.constant 9.99999974E-6 : f32
    %16 = vector.broadcast %cst_5 : f32 to vector<16x1xf32>
    %17 = arith.addf %13, %16 : vector<16x1xf32>
    %18 = math.rsqrt %17 : vector<16x1xf32>
    %19 = vector.broadcast %18 : vector<16x1xf32> to vector<16x128xf32>
    %20 = arith.mulf %15, %19 : vector<16x128xf32>
    %c0_6 = arith.constant 0 : index
    %c0_7 = arith.constant 0 : index
    %21 = vector.load %arg2[%c0_6, %c0_7] : memref<16x32xf32, #tpu.memory_space<vmem>>, vector<16x32xf32>
    %22 = arith.truncf %21 : vector<16x32xf32> to vector<16x32xbf16>
    %c0_8 = arith.constant 0 : index
    %c0_9 = arith.constant 0 : index
    %23 = vector.load %arg3[%c0_8, %c0_9] : memref<32x128xbf16, #tpu.memory_space<vmem>>, vector<32x128xbf16>
    %cst_10 = arith.constant dense<0.000000e+00> : vector<16x128xf32>
    %24 = tpu.matmul %22, %23, %cst_10 {dimension_numbers = #tpu.dot_dimension_numbers<[1], [0], [0], [1], [0, 0, 1, 1], [], []>} : vector<16x32xbf16>, vector<32x128xbf16>, vector<16x128xf32> -> vector<16x128xf32>
    %c0_11 = arith.constant 0 : index
    %c0_12 = arith.constant 0 : index
    %25 = vector.load %arg4[%c0_11, %c0_12] : memref<1x128xf32, #tpu.memory_space<vmem>>, vector<1x128xf32>
    %26 = vector.broadcast %25 : vector<1x128xf32> to vector<16x128xf32>
    %27 = arith.addf %24, %26 : vector<16x128xf32>
    %cst_13 = arith.constant 0.000000e+00 : f32
    %28 = vector.broadcast %cst_13 : f32 to vector<16x128xf32>
    %29 = arith.maximumf %27, %28 : vector<16x128xf32>
    %30 = arith.truncf %29 : vector<16x128xf32> to vector<16x128xbf16>
    %c0_14 = arith.constant 0 : index
    %c0_15 = arith.constant 0 : index
    %31 = vector.load %arg5[%c0_14, %c0_15] : memref<128x256xbf16, #tpu.memory_space<vmem>>, vector<128x256xbf16>
    %cst_16 = arith.constant dense<0.000000e+00> : vector<16x256xf32>
    %32 = tpu.matmul %30, %31, %cst_16 {dimension_numbers = #tpu.dot_dimension_numbers<[1], [0], [0], [1], [0, 0, 1, 1], [], []>} : vector<16x128xbf16>, vector<128x256xbf16>, vector<16x256xf32> -> vector<16x256xf32>
    %c0_17 = arith.constant 0 : index
    %c0_18 = arith.constant 0 : index
    %33 = vector.load %arg6[%c0_17, %c0_18] : memref<1x256xf32, #tpu.memory_space<vmem>>, vector<1x256xf32>
    %34 = vector.broadcast %33 : vector<1x256xf32> to vector<16x256xf32>
    %35 = arith.addf %32, %34 : vector<16x256xf32>
    %36 = vector.extract_strided_slice %35 {offsets = [0, 0], sizes = [16, 128], strides = [1, 1]} : vector<16x256xf32> to vector<16x128xf32>
    %37 = vector.extract_strided_slice %35 {offsets = [0, 128], sizes = [16, 128], strides = [1, 1]} : vector<16x256xf32> to vector<16x128xf32>
    %38 = arith.mulf %36, %20 : vector<16x128xf32>
    %39 = arith.addf %38, %37 : vector<16x128xf32>
    %c0_19 = arith.constant 0 : index
    %c0_20 = arith.constant 0 : index
    %40 = vector.load %arg7[%c0_19, %c0_20] : memref<16x128xf32, #tpu.memory_space<vmem>>, vector<16x128xf32>
    tpu.vector_store %arg7[%c0_19, %c0_20], %39 {strides = array<i32>} : memref<16x128xf32, #tpu.memory_space<vmem>>, vector<16x128xf32>,
    return
  }
  func.func @transform_0(%arg0: i32) -> (i32, i32) {
    %c0_i32 = arith.constant 0 : i32
    %c0_i32_0 = arith.constant 0 : i32
    return %arg0, %c0_i32 : i32, i32
  }
  func.func @transform_1(%arg0: i32) -> (i32, i32) {
    %c0_i32 = arith.constant 0 : i32
    %c0_i32_0 = arith.constant 0 : i32
    return %arg0, %c0_i32 : i32, i32
  }
  func.func @transform_2(%arg0: i32) -> (i32, i32) {
    %c0_i32 = arith.constant 0 : i32
    %c0_i32_0 = arith.constant 0 : i32
    %c0_i32_1 = arith.constant 0 : i32
    return %c0_i32, %c0_i32_0 : i32, i32
  }
  func.func @transform_3(%arg0: i32) -> (i32, i32) {
    %c0_i32 = arith.constant 0 : i32
    %c0_i32_0 = arith.constant 0 : i32
    %c0_i32_1 = arith.constant 0 : i32
    return %c0_i32, %c0_i32_0 : i32, i32
  }
  func.func @transform_4(%arg0: i32) -> (i32, i32) {
    %c0_i32 = arith.constant 0 : i32
    %c0_i32_0 = arith.constant 0 : i32
    %c0_i32_1 = arith.constant 0 : i32
    return %c0_i32, %c0_i32_0 : i32, i32
  }
  func.func @transform_5(%arg0: i32) -> (i32, i32) {
    %c0_i32 = arith.constant 0 : i32
    %c0_i32_0 = arith.constant 0 : i32
    %c0_i32_1 = arith.constant 0 : i32
    return %c0_i32, %c0_i32_0 : i32, i32
  }
  func.func @transform_6(%arg0: i32) -> (i32, i32) {
    %c0_i32 = arith.constant 0 : i32
    %c0_i32_0 = arith.constant 0 : i32
    return %arg0, %c0_i32 : i32, i32
  }
}

</mosaic_0001>

<bundles_post_ra>
// kernel: tpu_custom_call.1
= control target key start
LH: loop header
LB: loop body
LE: loop exit
PB: predicated region body
PF: predicated region fallthrough
CT: control target
= control target key end

     0   :  { %11 = vsyncpa [#allocation3], 0  ;;  %s684_s0 = inlined_call_operand.hbm [shape: f32[16,128], index: 0, kind: input, shape index: {}]   ;;  %s685_s1 = inlined_call_operand.hbm [shape: f32[16,32], index: 1, kind: input, shape index: {}]   ;;  %s686_s2 = inlined_call_operand.hbm [shape: bf16[32,128], index: 2, kind: input, shape index: {}]   ;;  %s687_s3 = inlined_call_operand.vmem [shape: f32[1,128], index: 3, kind: input, shape index: {}]   ;;  %s688_s4 = inlined_call_operand.hbm [shape: bf16[128,256], index: 4, kind: input, shape index: {}]   ;;  %s689_s5 = inlined_call_operand.vmem [shape: f32[1,256], index: 5, kind: input, shape index: {}]   ;;  %s690_s6 = inlined_call_operand.hbm [shape: f32[16,128], index: 6, kind: output, shape index: {}]  }
   0x1   :  { %12 = vsyncpa [#allocation6], 0 }
   0x2   :  { %13 = vsyncpa [#allocation9], 0 }
   0x3   :  { %14 = vsyncpa [#allocation4], 0  ;;  %s552_s21 = smov [#allocation5]   ;;  %s553_s23 = smov [#allocation2]  }
   0x4   :  { %s32_s22 = sshll.u32 %s552_s21, 4  ;;  %s20_s24 = sshll.u32 %s553_s23, 4  ;;  %s33_s22 = int_to_ptr.vmem [resolvable:$true] %s32_s22  ;;  %s599_s24 = int_to_ptr.vmem [resolvable:$true] %s20_s24 }
   0x5   :  { %s434_s27 = scalar_lea.hbm %s685_s1, 256 }
   0x6   :  { %p435_p0 = scmp.ne.s32.totalorder %s685_s1, %s434_s27  ;;  %p438_p1 = scmp.lt.u32.totalorder %s434_s27, %s685_s1 }
   0x8   :  { %p440_p2 = pnand %p438_p1, %p435_p0 }
   0xa   :  { %443 = shalt.err (!%p440_p2)
}
   0xb   :  { %s444_s8 = scalar_lea.vmem %s33_s22, 256  ;;  %p449_p4 = scmp.lt.s32.totalorder %s33_s22, %s33_s22 }
   0xc   :  { %p445_p3 = scmp.ne.s32.totalorder %s33_s22, %s444_s8  ;;  %p450_p5 = scmp.lt.s32.totalorder %s444_s8, %s444_s8 }
   0xe   :  { %p451_p6 = por %p450_p5, %p449_p4 }
  0x10   :  { %p452_p7 = pnand %p451_p6, %p445_p3 }
  0x12   :  { %455 = shalt.err (!%p452_p7)
}
  0x13   :  { %s554_s9 = smov 128   ;;  %s555_s10 = smov 8  }
  0x14   :  { %38 = dma.hbm_to_vmem [thread:$0]  %s685_s1, 256, %s33_s22, [#allocation6], %s554_s9, %s554_s9, %s555_s10  }
  0x15   :  { %s456_s15 = scalar_lea.hbm %s684_s0, 256 }
  0x16   :  { %p457_p8 = scmp.ne.s32.totalorder %s684_s0, %s456_s15  ;;  %p460_p9 = scmp.lt.u32.totalorder %s456_s15, %s684_s0 }
  0x18   :  { %p462_p10 = pnand %p460_p9, %p457_p8 }
  0x1a   :  { %465 = shalt.err (!%p462_p10)
}
  0x1b   :  { %s466_s20 = scalar_lea.vmem %s599_s24, 256  ;;  %p471_p12 = scmp.lt.s32.totalorder %s599_s24, %s599_s24 }
  0x1c   :  { %p467_p11 = scmp.ne.s32.totalorder %s599_s24, %s466_s20  ;;  %p472_p13 = scmp.lt.s32.totalorder %s466_s20, %s466_s20 }
  0x1e   :  { %p473_p0 = por %p472_p13, %p471_p12 }
  0x20   :  { %p474_p1 = pnand %p473_p0, %p467_p11 }
  0x22   :  { %477 = shalt.err (!%p474_p1)
}
  0x23   :  { %26 = dma.hbm_to_vmem [thread:$0]  %s684_s0, 256, %s599_s24, [#allocation3], %s554_s9, %s554_s9, %s555_s10  }
  0x24   :  { %s556_s22 = smov [#allocation7]   ;;  %s478_s27 = scalar_lea.hbm %s686_s2, 256 }
  0x25   :  { %s44_s23 = sshll.u32 %s556_s22, 4  ;;  %p479_p2 = scmp.ne.s32.totalorder %s686_s2, %s478_s27  ;;  %s45_s23 = int_to_ptr.vmem [resolvable:$true] %s44_s23 }
  0x26   :  { %p482_p3 = scmp.lt.u32.totalorder %s478_s27, %s686_s2 }
  0x28   :  { %p484_p4 = pnand %p482_p3, %p479_p2 }
  0x2a   :  { %487 = shalt.err (!%p484_p4)
}
  0x2b   :  { %s488_s8 = scalar_lea.vmem %s45_s23, 256  ;;  %p493_p6 = scmp.lt.s32.totalorder %s45_s23, %s45_s23 }
  0x2c   :  { %p489_p5 = scmp.ne.s32.totalorder %s45_s23, %s488_s8  ;;  %p494_p7 = scmp.lt.s32.totalorder %s488_s8, %s488_s8 }
  0x2e   :  { %p495_p8 = por %p494_p7, %p493_p6 }
  0x30   :  { %p496_p9 = pnand %p495_p8, %p489_p5 }
  0x32   :  { %499 = shalt.err (!%p496_p9)
}
  0x33   :  { %s557_s0 = smov 64   ;;  %s558_s24 = smov 4  }
  0x34   :  { %50 = dma.hbm_to_vmem [thread:$0]  %s686_s2, 256, %s45_s23, [#allocation6], %s557_s0, %s557_s0, %s558_s24  }
  0x35   :  { %s559_s13 = smov [#allocation8]   ;;  %s500_s17 = scalar_lea.hbm %s688_s4, 2048 }
  0x36   :  { %s58_s14 = sshll.u32 %s559_s13, 4  ;;  %p501_p10 = scmp.ne.s32.totalorder %s688_s4, %s500_s17  ;;  %s59_s14 = int_to_ptr.vmem [resolvable:$true] %s58_s14 }
  0x37   :  { %p504_p11 = scmp.lt.u32.totalorder %s500_s17, %s688_s4 }
  0x39   :  { %p506_p12 = pnand %p504_p11, %p501_p10 }
  0x3b   :  { %509 = shalt.err (!%p506_p12)
}
  0x3c   :  { %s510_s21 = scalar_lea.vmem %s59_s14, 2048  ;;  %p515_p0 = scmp.lt.s32.totalorder %s59_s14, %s59_s14 }
  0x3d   :  { %p511_p13 = scmp.ne.s32.totalorder %s59_s14, %s510_s21  ;;  %p516_p1 = scmp.lt.s32.totalorder %s510_s21, %s510_s21 }
  0x3f   :  { %p517_p2 = por %p516_p1, %p515_p0 }
  0x41   :  { %p518_p3 = pnand %p517_p2, %p511_p13 }
  0x43   :  { %521 = shalt.err (!%p518_p3)
}
  0x44   :  { %64 = dma.hbm_to_vmem [thread:$0]  %s688_s4, 2048, %s59_s14, [#allocation9], %s554_s9, %s554_s9, %s555_s10  }
  0x45   :  { %544 = dma.done.wait [#allocation3], 256  }
  0x46   :  { %545 = vsyncadd [#allocation3], 4294967040 }
  0x47   :  { %546 = dma.done.wait [#allocation6], 512  }
  0x48   :  { %547 = vsyncadd [#allocation6], 4294966784 }
  0x49   :  { %548 = dma.done.wait [#allocation9], 2048  }
  0x4a   :  { %549 = vsyncadd [#allocation9], 4294965248  ;;  %v560_v0 = vmov 0.0   ;;  %vm561_vm0 = vmmov 0   ;;  %v404_v1 = vld [vmem:[#allocation7] sm:$0xff]   ;;  %v405_v2 = vld [vmem:[#allocation7 + $0x8] sm:$0xff]   ;;  %v203_v52 = vlaneseq }
  0x4b   :  { %384 = vmatprep.subr.bf16.mxu0 %v560_v0  ;;  %388 = vmatprep.mubr.msk.bf16.mxu0 %vm561_vm0, %v560_v0  ;;  %v111_v3 = vld [vmem:[#allocation5] sm:$0xff]  ;;  %v112_v4 = vld [vmem:[#allocation5 + $0x8] sm:$0xff]  ;;  %v409_v7 = vld [vmem:[#allocation8 + $0x14] ss:$8 sps:$4 sm:$0xff]   ;;  %vm137_vm1 = vcmask 261120   ;;  %v562_v22 = vmov 0  }
  0x4c   :  { %385 = vmatpush3.bf16.msra.mxu0 %v404_v1  ;;  %v406_v5 = vld [vmem:[#allocation8 + $0x4] ss:$8 sps:$4 sm:$0xff]   ;;  %v408_v6 = vld [vmem:[#allocation8] ss:$8 sps:$4 sm:$0xff]   ;;  %v113_v8 = vpack.c.bf16 %v112_v4, %v111_v3  ;;  %v411_v9 = vld [vmem:[#allocation8 + $0x10] ss:$8 sps:$4 sm:$0xff]   ;;  %325 = vmatprep.mubr.bf16.mxu1 %v562_v22 }
  0x4d   :  { %386 = vmatprep.subr.bf16.mxu0 %v560_v0  ;;  %293 = vmatprep.subr.bf16.mxu1 %v406_v5  ;;  %v412_v10 = vld [vmem:[#allocation8 + $0x24] ss:$8 sps:$4 sm:$0xff]   ;;  %v414_v11 = vld [vmem:[#allocation8 + $0x20] ss:$8 sps:$4 sm:$0xff]   ;;  %v415_v12 = vld [vmem:[#allocation8 + $0x34] ss:$8 sps:$4 sm:$0xff]  }
  0x4e   :  { %294 = vmatpush1.bf16.msra.mxu1 %v408_v6  ;;  %v417_v13 = vld [vmem:[#allocation8 + $0x30] ss:$8 sps:$4 sm:$0xff]   ;;  %v418_v14 = vld [vmem:[#allocation8 + $0x44] ss:$8 sps:$4 sm:$0xff]   ;;  %v420_v15 = vld [vmem:[#allocation8 + $0x40] ss:$8 sps:$4 sm:$0xff]  }
  0x4f   :  { %295 = vmatprep.subr.bf16.mxu1 %v409_v7  ;;  %v421_v16 = vld [vmem:[#allocation8 + $0x54] ss:$8 sps:$4 sm:$0xff]   ;;  %v423_v17 = vld [vmem:[#allocation8 + $0x50] ss:$8 sps:$4 sm:$0xff]   ;;  %v424_v18 = vld [vmem:[#allocation8 + $0x64] ss:$8 sps:$4 sm:$0xff]  }
  0x50   :  { %387 = vmatpush3.bf16.msra.mxu0 %v405_v2  ;;  %v426_v19 = vld [vmem:[#allocation8 + $0x60] ss:$8 sps:$4 sm:$0xff]   ;;  %v427_v20 = vld [vmem:[#allocation8 + $0x74] ss:$8 sps:$4 sm:$0xff]   ;;  %v429_v21 = vld [vmem:[#allocation8 + $0x70] ss:$8 sps:$4 sm:$0xff]  }
  0x51   :  { %v80_v23 = vld [vmem:[#allocation2] sm:$0xff]  ;;  %v81_v24 = vld [vmem:[#allocation2 + $0x8] sm:$0xff]  ;;  %v204_v54 = vshrl.u32 %v203_v52, 7  ;;  %s563_s26 = smov [#allocation10]  }
  0x52   :  { %296 = vmatpush1.bf16.msra.mxu1 %v411_v9  ;;  %82 = vadd.xlane.f32.xlu0 %v80_v23  ;;  %v89_v25 = vmul.f32 %v80_v23, %v80_v23  ;;  %v90_v26 = vmul.f32 %v81_v24, %v81_v24  ;;  %v361_v27 = vld [vmem:[%s687_s3] ss:$0 sm:$0xff] }
  0x53   :  { %389 = vmatmul.mubr.msk.bf16.vlgmr.msra.gmra.mrb[0].mxu0 %vm137_vm1, %v113_v8  ;;  %297 = vmatprep.subr.bf16.mxu1 %v412_v10  ;;  %v205_v55 = vsub.s32 0, %v204_v54  ;;  %v201_v56 = vld [vmem:[%s689_s5] sm:$0x3]  ;;  %v209_v57 = vsub.s32 1, %v204_v54  ;;  %s347_s5 = sshll.u32 %s563_s26, 4  ;;  %s348_s5 = int_to_ptr.vmem [resolvable:$true] %s347_s5 }
  0x54   :  { %91 = vadd.xlane.f32.xlu1 %v89_v25  ;;  %s522_s27 = scalar_lea.vmem %s348_s5, 256  ;;  %p527_p5 = scmp.lt.s32.totalorder %s348_s5, %s348_s5 }
  0x55   :  { %v206_v59 = vrot.slane %v201_v56, %v205_v55  ;;  %v210_v61 = vrot.slane %v201_v56, %v209_v57  ;;  %p523_p4 = scmp.ne.s32.totalorder %s348_s5, %s522_s27  ;;  %p528_p6 = scmp.lt.s32.totalorder %s522_s27, %s522_s27 }
  0x56   :  { %298 = vmatpush1.bf16.msra.mxu1 %v414_v11  ;;  %84 = vadd.xlane.f32.xlu0 %v81_v24 }
  0x57   :  { %299 = vmatprep.subr.bf16.mxu1 %v415_v12  ;;  %p529_p7 = por %p528_p6, %p527_p5 }
  0x58   :  { %93 = vadd.xlane.f32.xlu1 %v90_v26 }
  0x59   :  { %p530_p8 = pnand %p529_p7, %p523_p4 }
  0x5a   :  { %300 = vmatpush1.bf16.msra.mxu1 %v417_v13 }
  0x5b   :  { %301 = vmatprep.subr.bf16.mxu1 %v418_v14 }
  0x5e   :  { %302 = vmatpush1.bf16.msra.mxu1 %v420_v15 }
  0x5f   :  { %303 = vmatprep.subr.bf16.mxu1 %v421_v16 }
  0x62   :  { %304 = vmatpush1.bf16.msra.mxu1 %v423_v17 }
  0x63   :  { %305 = vmatprep.subr.bf16.mxu1 %v424_v18 }
  0x66   :  { %306 = vmatpush1.bf16.msra.mxu1 %v426_v19 }
  0x67   :  { %307 = vmatprep.subr.bf16.mxu1 %v427_v20 }
  0x6a   :  { %308 = vmatpush1.bf16.msra.mxu1 %v429_v21 }
  0xdf   :  { %v83_v37 = vpop.xlane.xlu0 %82 }
  0xe0   :  { %v87_v40 = vmul.f32 0.0078125, %v83_v37 }
  0xe1   :  { %v92_v38 = vpop.xlane.xlu1 %91 }
  0xe2   :  { %v97_v43 = vmul.f32 %v87_v40, %v87_v40  ;;  %v95_v44 = vmul.f32 0.0078125, %v92_v38  ;;  %v103_v58 = vsub.f32 %v80_v23, %v87_v40 }
  0xe3   :  { %v85_v39 = vpop.xlane.xlu0 %84 }
  0xe4   :  { %v88_v41 = vmul.f32 0.0078125, %v85_v39  ;;  %v99_v47 = vsub.f32 %v95_v44, %v97_v43 }
  0xe5   :  { %v94_v42 = vpop.xlane.xlu1 %93 }
  0xe6   :  { %v98_v45 = vmul.f32 %v88_v41, %v88_v41  ;;  %v96_v46 = vmul.f32 0.0078125, %v94_v42  ;;  %v101_v49 = vmax.f32 %v99_v47, 0.0  ;;  %v104_v62 = vsub.f32 %v81_v24, %v88_v41 }
  0xe8   :  { %v100_v48 = vsub.f32 %v96_v46, %v98_v45  ;;  %v105_v51 = vadd.f32 1e-05, %v101_v49 }
  0xea   :  { %v102_v50 = vmax.f32 %v100_v48, 0.0  ;;  %430 = vrsqrt.f32 %v105_v51 }
  0xec   :  { %v106_v53 = vadd.f32 1e-05, %v102_v50 }
  0xee   :  { %432 = vrsqrt.f32 %v106_v53 }
  0xf4   :  { %v431_v60 = vpop.eup %430 }
  0xf5   :  { %v109_v1 = vmul.f32 %v431_v60, %v103_v58 }
  0xf8   :  { %v433_v63 = vpop.eup %432 }
  0xf9   :  { %v110_v7 = vmul.f32 %v433_v63, %v104_v62 }
 0x126   :  { %v175_v28 = vpop.f32.mrb[0].mxu0 }
 0x127   :  { %v176_v29 = vadd.f32 %v361_v27, %v175_v28  ;;  %v390_v30 = vpop.f32.mrb[1].mxu0 }
 0x128   :  { %v178_v31 = vpop.f32.mrb[2].mxu0 }
 0x129   :  { %v179_v32 = vadd.f32 %v361_v27, %v178_v31  ;;  %v391_v33 = vpop.f32.mrb[3].mxu0  ;;  %v182_v34 = vmax.f32 %v176_v29, 0.0 }
 0x12b   :  { %v183_v35 = vmax.f32 %v179_v32, 0.0 }
 0x12d   :  { %v184_v36 = vpack.c.bf16 %v183_v35, %v182_v34 }
 0x12f   :  { %326 = vmatmul.mubr.bf16.vlgmr.msra.gmra.mrb[0].mxu1 %v184_v36 }
 0x202   :  { %v327_v0 = vpop.f32.mrb[0].mxu1 }
 0x203   :  { %v328_v2 = vadd.f32 %v327_v0, %v206_v59  ;;  %v329_v3 = vpop.f32.mrb[1].mxu1 }
 0x204   :  { %v330_v4 = vadd.f32 %v329_v3, %v210_v61  ;;  %v331_v5 = vpop.f32.mrb[2].mxu1 }
 0x205   :  { %v336_v6 = vmul.f32 %v328_v2, %v109_v1  ;;  %v332_v8 = vadd.f32 %v331_v5, %v206_v59  ;;  %v333_v9 = vpop.f32.mrb[3].mxu1 }
 0x206   :  { %v334_v10 = vadd.f32 %v333_v9, %v210_v61 }
 0x207   :  { %v338_v11 = vadd.f32 %v336_v6, %v330_v4  ;;  %v337_v12 = vmul.f32 %v332_v8, %v110_v7 }
 0x209   :  { %340 = vst [vmem:[#allocation10] sm:$0xff] %v338_v11  ;;  %v339_v13 = vadd.f32 %v337_v12, %v334_v10 }
 0x20b   :  { %341 = vst [vmem:[#allocation10 + $0x8] sm:$0xff] %v339_v13 }
 0x20c   :  { %533 = shalt.err (!%p530_p8)
}
 0x20d   :  { %s534_s30 = scalar_lea.hbm %s690_s6, 256 }
 0x20e   :  { %p535_p9 = scmp.ne.s32.totalorder %s690_s6, %s534_s30  ;;  %p538_p10 = scmp.lt.u32.totalorder %s534_s30, %s690_s6 }
 0x210   :  { %p540_p11 = pnand %p538_p10, %p535_p9 }
 0x212   :  { %543 = shalt.err (!%p540_p11)
}
 0x213   :  { %353 = dma.vmem_to_hbm [thread:$0]  %s348_s5, 256, %s690_s6, [#allocation4], %s554_s9, %s554_s9, %s555_s10  }
 0x214   :  { %550 = dma.done.wait [#allocation4], 256  }
 0x215   :  { %551 = vsyncadd [#allocation4], 4294967040 }
 0x216   :  { %357 = vsyncpa [#allocation3], 1 }
 0x217   :  { %358 = vsyncpa [#allocation6], 1 }
 0x218   :  { %359 = vsyncpa [#allocation9], 1 }
 0x219   :  { %360 = vsyncpa [#allocation4], 1 }

</bundles_post_ra>
